<compile_context>
chip_gen: v6e
topology: v6e:2x2x1
jax: 0.10.0
libtpu: 0.0.40
codegen_flags: <defaults>
</compile_context>

<pallas_src>
import functools
import math

import jax
import jax.numpy as jnp
from jax import lax
from jax.experimental import pallas as pl
from jax.experimental.pallas import tpu as pltpu

HIDDEN = 128     # hidden width hardcoded by the PyTorch module
LANE = 128       # TPU lane width == packed output slab width


def _round_up(x, m):
    return ((x + m - 1) // m) * m


def _default_fuse_layer2():
    # v6e/v7x: 256-wide MXU -> fuse layer 2 into one block-diagonal 256x256 matmul.
    # v5e: 4x128^2 MXU -> keep two K=128 matmuls (zero-padded 256x256 wastes MACs).
    try:
        kind = jax.devices()[0].device_kind.lower()
    except Exception:
        return True
    return "v5" not in kind


# --------------------------------------------------------------------------- #
# Kernel
# --------------------------------------------------------------------------- #
def _actor_critic_kernel(
    state_ref, action_ref, inv_var_ref,
    w1_ref, b1_ref, w2_ref, b2_ref, hw_ref, hb_ref,
    out_ref,
    *, action_dim: int, fuse_layer2: bool,
):
    f32 = jnp.float32
    cdt = w1_ref.dtype            # matmul compute dtype (bf16 or f32)
    H = HIDDEN
    A = action_dim

    x = state_ref[...].astype(cdt)                                    # (TB, S)

    # fused actor/critic layer 1: one (S, 2H) matmul, f32 accumulation
    h1 = jnp.dot(x, w1_ref[...], preferred_element_type=f32) + b1_ref[...]
    h1 = jnp.maximum(h1, 0.0)                                         # (TB, 2H) f32

    if fuse_layer2:
        # v6e/v7x: one K=2H, N=2H matmul against the block-diagonal layer-2 weight
        h2 = jnp.dot(h1.astype(cdt), w2_ref[...], preferred_element_type=f32)
        h2 = jnp.maximum(h2 + b2_ref[...], 0.0).astype(cdt)           # (TB, 2H)
        head = jnp.dot(h2, hw_ref[...], preferred_element_type=f32) + hb_ref[...]
    else:
        # v5e: two K=128 matmuls on the diagonal blocks; split head matmul so
        # there is no lane-axis concatenate.
        ha = h1[:, :H].astype(cdt)
        hc = h1[:, H:].astype(cdt)
        a2 = jnp.dot(ha, w2_ref[:H, :H], preferred_element_type=f32)
        a2 = jnp.maximum(a2 + b2_ref[:, :H], 0.0).astype(cdt)
        c2 = jnp.dot(hc, w2_ref[H:, H:], preferred_element_type=f32)
        c2 = jnp.maximum(c2 + b2_ref[:, H:], 0.0).astype(cdt)
        head = (jnp.dot(a2, hw_ref[:H, :], preferred_element_type=f32)
                + jnp.dot(c2, hw_ref[H:, :], preferred_element_type=f32)
                + hb_ref[...])

    # head slab columns: [0, A) -> pre-ReLU actor mean, col A -> critic value,
    # col A+1 -> -(logdet + A*log(2*pi))/2 (via the bias), rest -> 0.
    lane = lax.broadcasted_iota(jnp.int32, head.shape, 1)
    out = jnp.where(lane < A, jnp.maximum(head, 0.0), head)           # ReLU on mean only

    # diag-MVN Mahalanobis term on the narrow (TB, A) slices — action stays
    # (B, A) in HBM, no 128-lane padding anywhere.
    diff = action_ref[...].astype(f32) - out[:, :A]
    maha = jnp.sum(diff * diff * inv_var_ref[...], axis=-1, keepdims=True)  # (TB, 1)
    out = out + jnp.where(lane == A + 1, -0.5 * maha, 0.0)

    out_ref[...] = out.astype(out_ref.dtype)


# --------------------------------------------------------------------------- #
# Weight packing (call once per params; cache across evaluate() calls)
# --------------------------------------------------------------------------- #
def pack_operands(params, action_var, *, use_bf16=True):
    f32 = jnp.float32
    wdt = jnp.bfloat16 if use_bf16 else jnp.float32
    H = HIDDEN
    A = params["w3a"].shape[1]
    assert A + 2 <= LANE, "action_dim must fit in the packed output slab"

    var = action_var.reshape(A).astype(f32)
    logdet = jnp.sum(jnp.log(var))
    log2pi = math.log(2.0 * math.pi)

    w1 = jnp.concatenate([params["w1a"], params["w1c"]], axis=1).astype(wdt)
    b1 = jnp.concatenate([params["b1a"], params["b1c"]], axis=1).astype(f32)

    w2 = jnp.zeros((2 * H, 2 * H), f32)
    w2 = w2.at[:H, :H].set(params["w2a"])
    w2 = w2.at[H:, H:].set(params["w2c"])
    w2 = w2.astype(wdt)
    b2 = jnp.concatenate([params["b2a"], params["b2c"]], axis=1).astype(f32)

    hw = jnp.zeros((2 * H, LANE), f32)
    hw = hw.at[:H, :A].set(params["w3a"])
    hw = hw.at[H:, A].set(params["w3c"][:, 0])
    hw = hw.astype(wdt)

    hb = jnp.zeros((1, LANE), f32)
    hb = hb.at[0, :A].set(params["b3a"][0])
    hb = hb.at[0, A].set(params["b3c"][0, 0])
    hb = hb.at[0, A + 1].set(-0.5 * (logdet + A * log2pi))

    inv_var = (1.0 / var).reshape(1, A)

    return dict(inv_var=inv_var, w1=w1, b1=b1, w2=w2, b2=b2, hw=hw, hb=hb,
                logdet=logdet, action_dim=A)


# --------------------------------------------------------------------------- #
# Wrapper
# --------------------------------------------------------------------------- #
def actor_critic_evaluate(state, action, packed, *, fuse_layer2=None,
                          tb_max=1024, out_dtype=jnp.float32):
    """Pallas equivalent of ActorCritic.evaluate() (continuous actions).

    Returns (action_logprobs (B,), state_values (B,1), dist_entropy (B,),
             action_mean (B,A))."""
    if fuse_layer2 is None:
        fuse_layer2 = _default_fuse_layer2()
    A = packed["action_dim"]
    if action.ndim == 1:                      # mirrors the action_dim==1 reshape
        action = action.reshape(-1, A)
    B, S = state.shape

    cdt = packed["w1"].dtype
    state_in = state.astype(cdt)              # bf16 halves the state read
    action_in = action.astype(jnp.float32)    # keep Mahalanobis term in f32

    # tile: multiple of 8, capped so the grid has >=2 steps when the batch
    # allows it (v7x megacore); no wrapper-side batch padding.
    tb_cap = max(8, (int(tb_max) // 8) * 8)
    TB = max(8, min(tb_cap, _round_up(pl.cdiv(B, 2), 8)))
    grid = (pl.cdiv(B, TB),)

    row_spec = lambda d: pl.BlockSpec((TB, d), lambda i: (i, 0))
    const_spec = lambda a: pl.BlockSpec(a.shape, lambda i: (0, 0))

    out = pl.pallas_call(
        functools.partial(_actor_critic_kernel, action_dim=A,
                          fuse_layer2=fuse_layer2),
        out_shape=jax.ShapeDtypeStruct((B, LANE), out_dtype),
        grid=grid,
        in_specs=[
            row_spec(S),                       # state  (batch-tiled)
            row_spec(A),                       # action (batch-tiled, narrow)
            const_spec(packed["inv_var"]),     # VMEM-resident params below
            const_spec(packed["w1"]), const_spec(packed["b1"]),
            const_spec(packed["w2"]), const_spec(packed["b2"]),
            const_spec(packed["hw"]), const_spec(packed["hb"]),
        ],
        out_specs=row_spec(LANE),
        compiler_params=pltpu.CompilerParams(
            dimension_semantics=("parallel",)),
    )(state_in, action_in, packed["inv_var"], packed["w1"], packed["b1"],
      packed["w2"], packed["b2"], packed["hw"], packed["hb"])

    out = out.astype(jnp.float32)
    mean = out[:, :A]
    value = out[:, A:A + 1]
    logp = out[:, A + 1]

    # entropy of a fixed-covariance diag MVN is batch independent -> wrapper-side
    log2pi = math.log(2.0 * math.pi)
    entropy = jnp.broadcast_to(
        0.5 * A * (1.0 + log2pi) + 0.5 * packed["logdet"], (B,))
    return logp, value, entropy, mean


# --------------------------------------------------------------------------- #
# Init + reference
# --------------------------------------------------------------------------- #
def init_params(key, state_dim, action_dim, hidden=HIDDEN):
    """Mimics torch.nn.Linear default init; weights stored (in, out)."""
    def linear(k, fan_in, fan_out):
        kw, kb = jax.random.split(k)
        bound = 1.0 / math.sqrt(fan_in)
        w = jax.random.uniform(kw, (fan_in, fan_out), jnp.float32, -bound, bound)
        b = jax.random.uniform(kb, (1, fan_out), jnp.float32, -bound, bound)
        return w, b

    keys = jax.random.split(key, 6)
    w1a, b1a = linear(keys[0], state_dim, hidden)
    w2a, b2a = linear(keys[1], hidden, hidden)
    w3a, b3a = linear(keys[2], hidden, action_dim)
    w1c, b1c = linear(keys[3], state_dim, hidden)
    w2c, b2c = linear(keys[4], hidden, hidden)
    w3c, b3c = linear(keys[5], hidden, 1)
    return dict(w1a=w1a, b1a=b1a, w2a=w2a, b2a=b2a, w3a=w3a, b3a=b3a,
                w1c=w1c, b1c=b1c, w2c=w2c, b2c=b2c, w3c=w3c, b3c=b3c)


def _reference_evaluate(state, action, params, action_var,
                        compute_dtype=jnp.float32):
    """Pure-JAX reference mirroring the PyTorch module; optional bf16-at-dot
    casting to match the kernel's fast path (f32 accumulation/elementwise)."""
    f32 = jnp.float32

    def dot(a, b):
        return jnp.dot(a.astype(compute_dtype), b.astype(compute_dtype),
                       preferred_element_type=f32,
                       precision=lax.Precision.HIGHEST)

    relu = lambda z: jnp.maximum(z, 0.0)

    h = relu(dot(state, params["w1a"]) + params["b1a"])
    h = relu(dot(h, params["w2a"]) + params["b2a"])
    mean = relu(dot(h, params["w3a"]) + params["b3a"])
    c = relu(dot(state, params["w1c"]) + params["b1c"])
    c = relu(dot(c, params["w2c"]) + params["b2c"])
    val = dot(c, params["w3c"]) + params["b3c"]

    d = action.shape[-1]
    var = action_var.reshape(1, -1).astype(f32)
    log2pi = math.log(2.0 * math.pi)
    maha = jnp.sum((action - mean) ** 2 / var, axis=-1)
    logdet = jnp.sum(jnp.log(var))
    logp = -0.5 * (maha + logdet + d * log2pi)
    ent = jnp.full((action.shape[0],), 0.5 * d * (1.0 + log2pi)) + 0.5 * logdet
    return logp, val, ent, mean


# --------------------------------------------------------------------------- #
# Demo / correctness check
# --------------------------------------------------------------------------- #
if __name__ == "__main__":
    STATE_DIM, ACTION_DIM = 32, 4
    action_std_init = 0.6

    key = jax.random.PRNGKey(0)
    params = init_params(jax.random.fold_in(key, 1), STATE_DIM, ACTION_DIM)
    action_var = jnp.full((ACTION_DIM,), action_std_init * action_std_init,
                          dtype=jnp.float32)

    # pack once, reuse across calls (PPO params are fixed within an update epoch)
    packed_f32 = pack_operands(params, action_var, use_bf16=False)
    packed_bf16 = pack_operands(params, action_var, use_bf16=True)

    def run_case(B, packed, *, tb_max, fuse_layer2, ref_dtype, tol):
        kcase = jax.random.fold_in(key, 1000 + 7 * B + tb_max + int(fuse_layer2))
        ks, ka = jax.random.split(kcase)
        state = jax.random.normal(ks, (B, STATE_DIM), jnp.float32)
        action = jax.random.normal(ka, (B, ACTION_DIM), jnp.float32)

        logp, val, ent, mean = actor_critic_evaluate(
            state, action, packed, tb_max=tb_max, fuse_layer2=fuse_layer2)
        jax.block_until_ready((logp, val, ent, mean))

        r_logp, r_val, r_ent, r_mean = _reference_evaluate(
            state, action, params, action_var, compute_dtype=ref_dtype)
        assert jnp.allclose(mean, r_mean, atol=tol, rtol=tol), "action_mean mismatch"
        assert jnp.allclose(val, r_val, atol=tol, rtol=tol), "value mismatch"
        assert jnp.allclose(logp, r_logp, atol=tol, rtol=tol), "log_prob mismatch"
        assert jnp.allclose(ent, r_ent, atol=tol, rtol=tol), "entropy mismatch"

    # f32 matmuls, fused (v6e/v7x-style) block-diagonal layer-2, single grid step
    run_case(8, packed_f32, tb_max=1024, fuse_layer2=True,
             ref_dtype=jnp.float32, tol=2e-3)
    # bf16 fast path, fused layer-2, 2-step grid with a partial last tile (20 rows, TB=16)
    run_case(20, packed_bf16, tb_max=1024, fuse_layer2=True,
             ref_dtype=jnp.bfloat16, tol=2e-3)
    # bf16 fast path, split (v5e-style) layer-2, 3-step grid with a 4-row tail tile
    run_case(20, packed_bf16, tb_max=8, fuse_layer2=False,
             ref_dtype=jnp.bfloat16, tol=2e-3)

    print("KERNEL_OK")
</pallas_src>

<mosaic_0001>
module attributes {stable_mosaic.version = 11 : i64} {
  func.func @_actor_critic_kernel(%arg0: i32, %arg1: memref<8x32xf32, #tpu.memory_space<vmem>>, %arg2: memref<8x4xf32, #tpu.memory_space<vmem>>, %arg3: memref<1x4xf32, #tpu.memory_space<vmem>>, %arg4: memref<32x256xf32, #tpu.memory_space<vmem>>, %arg5: memref<1x256xf32, #tpu.memory_space<vmem>>, %arg6: memref<256x256xf32, #tpu.memory_space<vmem>>, %arg7: memref<1x256xf32, #tpu.memory_space<vmem>>, %arg8: memref<256x128xf32, #tpu.memory_space<vmem>>, %arg9: memref<1x128xf32, #tpu.memory_space<vmem>>, %arg10: memref<8x128xf32, #tpu.memory_space<vmem>>) attributes {dimension_semantics = [#tpu.dimension_semantics<parallel>], iteration_bounds = array<i64: 1>, scalar_prefetch = 0 : i64, scratch_operands = 0 : i64, tpu.core_type = #tpu.core_type<tc>, window_params = [{transform_indices = @transform_0, window_bounds = array<i64: 8, 32>}, {transform_indices = @transform_1, window_bounds = array<i64: 8, 4>}, {pipeline_mode = #tpu.pipeline_mode<synchronous>, transform_indices = @transform_2, window_bounds = array<i64: 1, 4>}, {pipeline_mode = #tpu.pipeline_mode<synchronous>, transform_indices = @transform_3, window_bounds = array<i64: 32, 256>}, {pipeline_mode = #tpu.pipeline_mode<synchronous>, transform_indices = @transform_4, window_bounds = array<i64: 1, 256>}, {pipeline_mode = #tpu.pipeline_mode<synchronous>, transform_indices = @transform_5, window_bounds = array<i64: 256, 256>}, {pipeline_mode = #tpu.pipeline_mode<synchronous>, transform_indices = @transform_6, window_bounds = array<i64: 1, 256>}, {pipeline_mode = #tpu.pipeline_mode<synchronous>, transform_indices = @transform_7, window_bounds = array<i64: 256, 128>}, {pipeline_mode = #tpu.pipeline_mode<synchronous>, transform_indices = @transform_8, window_bounds = array<i64: 1, 128>}, {transform_indices = @transform_9, window_bounds = array<i64: 8, 128>}]} {
    %c0 = arith.constant 0 : index
    %c0_0 = arith.constant 0 : index
    %0 = vector.load %arg1[%c0, %c0_0] : memref<8x32xf32, #tpu.memory_space<vmem>>, vector<8x32xf32>
    %c0_1 = arith.constant 0 : index
    %c0_2 = arith.constant 0 : index
    %1 = vector.load %arg4[%c0_1, %c0_2] : memref<32x256xf32, #tpu.memory_space<vmem>>, vector<32x256xf32>
    %cst = arith.constant dense<0.000000e+00> : vector<8x256xf32>
    %2 = tpu.matmul %0, %1, %cst {dimension_numbers = #tpu.dot_dimension_numbers<[1], [0], [0], [1], [0, 0, 1, 1], [], []>} : vector<8x32xf32>, vector<32x256xf32>, vector<8x256xf32> -> vector<8x256xf32>
    %c0_3 = arith.constant 0 : index
    %c0_4 = arith.constant 0 : index
    %3 = vector.load %arg5[%c0_3, %c0_4] : memref<1x256xf32, #tpu.memory_space<vmem>>, vector<1x256xf32>
    %4 = vector.broadcast %3 : vector<1x256xf32> to vector<8x256xf32>
    %5 = arith.addf %2, %4 : vector<8x256xf32>
    %cst_5 = arith.constant 0.000000e+00 : f32
    %6 = vector.broadcast %cst_5 : f32 to vector<8x256xf32>
    %7 = arith.maximumf %5, %6 : vector<8x256xf32>
    %c0_6 = arith.constant 0 : index
    %c0_7 = arith.constant 0 : index
    %8 = vector.load %arg6[%c0_6, %c0_7] : memref<256x256xf32, #tpu.memory_space<vmem>>, vector<256x256xf32>
    %cst_8 = arith.constant dense<0.000000e+00> : vector<8x256xf32>
    %9 = tpu.matmul %7, %8, %cst_8 {dimension_numbers = #tpu.dot_dimension_numbers<[1], [0], [0], [1], [0, 0, 1, 1], [], []>} : vector<8x256xf32>, vector<256x256xf32>, vector<8x256xf32> -> vector<8x256xf32>
    %c0_9 = arith.constant 0 : index
    %c0_10 = arith.constant 0 : index
    %10 = vector.load %arg7[%c0_9, %c0_10] : memref<1x256xf32, #tpu.memory_space<vmem>>, vector<1x256xf32>
    %11 = vector.broadcast %10 : vector<1x256xf32> to vector<8x256xf32>
    %12 = arith.addf %9, %11 : vector<8x256xf32>
    %cst_11 = arith.constant 0.000000e+00 : f32
    %13 = vector.broadcast %cst_11 : f32 to vector<8x256xf32>
    %14 = arith.maximumf %12, %13 : vector<8x256xf32>
    %c0_12 = arith.constant 0 : index
    %c0_13 = arith.constant 0 : index
    %15 = vector.load %arg8[%c0_12, %c0_13] : memref<256x128xf32, #tpu.memory_space<vmem>>, vector<256x128xf32>
    %cst_14 = arith.constant dense<0.000000e+00> : vector<8x128xf32>
    %16 = tpu.matmul %14, %15, %cst_14 {dimension_numbers = #tpu.dot_dimension_numbers<[1], [0], [0], [1], [0, 0, 1, 1], [], []>} : vector<8x256xf32>, vector<256x128xf32>, vector<8x128xf32> -> vector<8x128xf32>
    %c0_15 = arith.constant 0 : index
    %c0_16 = arith.constant 0 : index
    %17 = vector.load %arg9[%c0_15, %c0_16] : memref<1x128xf32, #tpu.memory_space<vmem>>, vector<1x128xf32>
    %18 = vector.broadcast %17 : vector<1x128xf32> to vector<8x128xf32>
    %19 = arith.addf %16, %18 : vector<8x128xf32>
    %20 = tpu.iota {dimensions = array<i32: 1>} : vector<8x128xi32>
    %c4_i32 = arith.constant 4 : i32
    %21 = vector.broadcast %c4_i32 : i32 to vector<8x128xi32>
    %22 = arith.cmpi slt, %20, %21 : vector<8x128xi32>
    %cst_17 = arith.constant 0.000000e+00 : f32
    %23 = vector.broadcast %cst_17 : f32 to vector<8x128xf32>
    %24 = arith.maximumf %19, %23 : vector<8x128xf32>
    %25 = arith.select %22, %24, %19 : vector<8x128xi1>, vector<8x128xf32>
    %c0_18 = arith.constant 0 : index
    %c0_19 = arith.constant 0 : index
    %26 = vector.load %arg2[%c0_18, %c0_19] : memref<8x4xf32, #tpu.memory_space<vmem>>, vector<8x4xf32>
    %27 = vector.extract_strided_slice %25 {offsets = [0, 0], sizes = [8, 4], strides = [1, 1]} : vector<8x128xf32> to vector<8x4xf32>
    %28 = arith.subf %26, %27 : vector<8x4xf32>
    %29 = arith.mulf %28, %28 : vector<8x4xf32>
    %c0_20 = arith.constant 0 : index
    %c0_21 = arith.constant 0 : index
    %30 = vector.load %arg3[%c0_20, %c0_21] : memref<1x4xf32, #tpu.memory_space<vmem>>, vector<1x4xf32>
    %31 = vector.broadcast %30 : vector<1x4xf32> to vector<8x4xf32>
    %32 = arith.mulf %29, %31 : vector<8x4xf32>
    %cst_22 = arith.constant dense<0.000000e+00> : vector<8xf32>
    %33 = vector.multi_reduction <add>, %32, %cst_22 [1] : vector<8x4xf32> to vector<8xf32>
    %34 = vector.shape_cast %33 : vector<8xf32> to vector<8x1xf32>
    %c5_i32 = arith.constant 5 : i32
    %35 = vector.broadcast %c5_i32 : i32 to vector<8x128xi32>
    %36 = arith.cmpi eq, %20, %35 : vector<8x128xi32>
    %cst_23 = arith.constant -5.000000e-01 : f32
    %37 = vector.broadcast %cst_23 : f32 to vector<8x1xf32>
    %38 = arith.mulf %37, %34 : vector<8x1xf32>
    %cst_24 = arith.constant 0.000000e+00 : f32
    %39 = vector.shape_cast %38 : vector<8x1xf32> to vector<8x1xf32>
    %40 = vector.broadcast %39 : vector<8x1xf32> to vector<8x128xf32>
    %41 = vector.broadcast %cst_24 : f32 to vector<8x128xf32>
    %42 = arith.select %36, %40, %41 : vector<8x128xi1>, vector<8x128xf32>
    %43 = arith.addf %25, %42 : vector<8x128xf32>
    %c0_25 = arith.constant 0 : index
    %c0_26 = arith.constant 0 : index
    %44 = vector.load %arg10[%c0_25, %c0_26] : memref<8x128xf32, #tpu.memory_space<vmem>>, vector<8x128xf32>
    tpu.vector_store %arg10[%c0_25, %c0_26], %43 {strides = array<i32>} : memref<8x128xf32, #tpu.memory_space<vmem>>, vector<8x128xf32>,
    return
  }
  func.func @transform_0(%arg0: i32) -> (i32, i32) {
    %c0_i32 = arith.constant 0 : i32
    %c0_i32_0 = arith.constant 0 : i32
    return %arg0, %c0_i32 : i32, i32
  }
  func.func @transform_1(%arg0: i32) -> (i32, i32) {
    %c0_i32 = arith.constant 0 : i32
    %c0_i32_0 = arith.constant 0 : i32
    return %arg0, %c0_i32 : i32, i32
  }
  func.func @transform_2(%arg0: i32) -> (i32, i32) {
    %c0_i32 = arith.constant 0 : i32
    %c0_i32_0 = arith.constant 0 : i32
    %c0_i32_1 = arith.constant 0 : i32
    return %c0_i32, %c0_i32_0 : i32, i32
  }
  func.func @transform_3(%arg0: i32) -> (i32, i32) {
    %c0_i32 = arith.constant 0 : i32
    %c0_i32_0 = arith.constant 0 : i32
    %c0_i32_1 = arith.constant 0 : i32
    return %c0_i32, %c0_i32_0 : i32, i32
  }
  func.func @transform_4(%arg0: i32) -> (i32, i32) {
    %c0_i32 = arith.constant 0 : i32
    %c0_i32_0 = arith.constant 0 : i32
    %c0_i32_1 = arith.constant 0 : i32
    return %c0_i32, %c0_i32_0 : i32, i32
  }
  func.func @transform_5(%arg0: i32) -> (i32, i32) {
    %c0_i32 = arith.constant 0 : i32
    %c0_i32_0 = arith.constant 0 : i32
    %c0_i32_1 = arith.constant 0 : i32
    return %c0_i32, %c0_i32_0 : i32, i32
  }
  func.func @transform_6(%arg0: i32) -> (i32, i32) {
    %c0_i32 = arith.constant 0 : i32
    %c0_i32_0 = arith.constant 0 : i32
    %c0_i32_1 = arith.constant 0 : i32
    return %c0_i32, %c0_i32_0 : i32, i32
  }
  func.func @transform_7(%arg0: i32) -> (i32, i32) {
    %c0_i32 = arith.constant 0 : i32
    %c0_i32_0 = arith.constant 0 : i32
    %c0_i32_1 = arith.constant 0 : i32
    return %c0_i32, %c0_i32_0 : i32, i32
  }
  func.func @transform_8(%arg0: i32) -> (i32, i32) {
    %c0_i32 = arith.constant 0 : i32
    %c0_i32_0 = arith.constant 0 : i32
    %c0_i32_1 = arith.constant 0 : i32
    return %c0_i32, %c0_i32_0 : i32, i32
  }
  func.func @transform_9(%arg0: i32) -> (i32, i32) {
    %c0_i32 = arith.constant 0 : i32
    %c0_i32_0 = arith.constant 0 : i32
    return %arg0, %c0_i32 : i32, i32
  }
}

</mosaic_0001>

<bundles_post_ra>
// kernel: tpu_custom_call.1
= control target key start
LH: loop header
LB: loop body
LE: loop exit
PB: predicated region body
PF: predicated region fallthrough
CT: control target
= control target key end

     0   :  { %14 = vsyncpa [#allocation3], 0  ;;  %s693_s0 = inlined_call_operand.vmem [shape: f32[8,32], index: 0, kind: input, shape index: {}]   ;;  %s694_s1 = inlined_call_operand.vmem [shape: f32[8,4], index: 1, kind: input, shape index: {}]   ;;  %s695_s2 = inlined_call_operand.vmem [shape: f32[1,4], index: 2, kind: input, shape index: {}]   ;;  %s696_s3 = inlined_call_operand.hbm [shape: f32[32,256], index: 3, kind: input, shape index: {}]   ;;  %s697_s4 = inlined_call_operand.vmem [shape: f32[1,256], index: 4, kind: input, shape index: {}]   ;;  %s698_s5 = inlined_call_operand.hbm [shape: f32[256,256], index: 5, kind: input, shape index: {}]   ;;  %s699_s6 = inlined_call_operand.vmem [shape: f32[1,256], index: 6, kind: input, shape index: {}]   ;;  %s700_s7 = inlined_call_operand.hbm [shape: f32[256,128], index: 7, kind: input, shape index: {}]   ;;  %s701_s8 = inlined_call_operand.vmem [shape: f32[1,128], index: 8, kind: input, shape index: {}]   ;;  %s702_s9 = inlined_call_operand.hbm [shape: f32[8,128], index: 9, kind: output, shape index: {}]  }
   0x1   :  { %15 = vsyncpa [#allocation6], 0 }
   0x2   :  { %16 = vsyncpa [#allocation4], 0  ;;  %s604_s30 = smov [#allocation5]   ;;  %s605_s11 = smov [#allocation2]  }
   0x3   :  { %s42_s10 = sshll.u32 %s604_s30, 4  ;;  %s28_s12 = sshll.u32 %s605_s11, 4  ;;  %s43_s10 = int_to_ptr.vmem [resolvable:$true] %s42_s10  ;;  %s29_s12 = int_to_ptr.vmem [resolvable:$true] %s28_s12 }
   0x4   :  { %s526_s13 = scalar_lea.vmem %s43_s10, 8192  ;;  %p531_p1 = scmp.lt.s32.totalorder %s43_s10, %s43_s10 }
   0x5   :  { %p527_p0 = scmp.ne.s32.totalorder %s43_s10, %s526_s13  ;;  %p532_p2 = scmp.lt.s32.totalorder %s526_s13, %s526_s13 }
   0x7   :  { %p533_p3 = por %p532_p2, %p531_p1 }
   0x9   :  { %p534_p4 = pnand %p533_p3, %p527_p0 }
   0xb   :  { %537 = shalt.err (!%p534_p4)
}
   0xc   :  { %s606_s14 = smov 256   ;;  %s607_s15 = smov 16  }
   0xd   :  { %48 = dma.hbm_to_vmem [thread:$0]  %s698_s5, 8192, %s43_s10, [#allocation6], %s606_s14, %s606_s14, %s607_s15  }
   0xe   :  { %s546_s18 = scalar_lea.vmem %s29_s12, 1024  ;;  %p551_p6 = scmp.lt.s32.totalorder %s29_s12, %s29_s12 }
   0xf   :  { %p547_p5 = scmp.ne.s32.totalorder %s29_s12, %s546_s18  ;;  %p552_p7 = scmp.lt.s32.totalorder %s546_s18, %s546_s18 }
  0x11   :  { %p553_p8 = por %p552_p7, %p551_p6 }
  0x13   :  { %p554_p9 = pnand %p553_p8, %p547_p5 }
  0x15   :  { %557 = shalt.err (!%p554_p9)
}
  0x16   :  { %34 = dma.hbm_to_vmem [thread:$0]  %s696_s3, 1024, %s29_s12, [#allocation3], %s606_s14, %s606_s14, %s607_s15  }
  0x17   :  { %s608_s21 = smov [#allocation7]  }
  0x18   :  { %s56_s22 = sshll.u32 %s608_s21, 4  ;;  %s57_s22 = int_to_ptr.vmem [resolvable:$true] %s56_s22 }
  0x19   :  { %s566_s23 = scalar_lea.vmem %s57_s22, 4096  ;;  %p571_p11 = scmp.lt.s32.totalorder %s57_s22, %s57_s22 }
  0x1a   :  { %p567_p10 = scmp.ne.s32.totalorder %s57_s22, %s566_s23  ;;  %p572_p12 = scmp.lt.s32.totalorder %s566_s23, %s566_s23 }
  0x1c   :  { %p573_p13 = por %p572_p12, %p571_p11 }
  0x1e   :  { %p574_p0 = pnand %p573_p13, %p567_p10 }
  0x20   :  { %577 = shalt.err (!%p574_p0)
}
  0x21   :  { %s609_s5 = smov 128   ;;  %s610_s24 = smov 8  }
  0x22   :  { %62 = dma.hbm_to_vmem [thread:$0]  %s700_s7, 4096, %s57_s22, [#allocation6], %s609_s5, %s609_s5, %s610_s24  }
  0x23   :  { %598 = dma.done.wait [#allocation3], 1024  }
  0x24   :  { %599 = vsyncadd [#allocation3], 4294966272 }
  0x25   :  { %600 = dma.done.wait [#allocation6], 12288  }
  0x26   :  { %601 = vsyncadd [#allocation6], 4294955008  ;;  %v611_v0 = vmov 0.0   ;;  %v82_v1 = vld [vmem:[#allocation2 + $0x38] sm:$0xff]  ;;  %v81_v2 = vld [vmem:[#allocation2 + $0x30] sm:$0xff]  ;;  %vm95_vm0 = vcmask 261120  }
  0x27   :  { %163 = vmatprep.mubr.f32.mxu0 %v611_v0  ;;  %v80_v3 = vld [vmem:[#allocation2 + $0x28] sm:$0xff]  ;;  %123 = vmatprep.subr.mxu0 %v82_v1  ;;  %v79_v4 = vld [vmem:[#allocation2 + $0x20] sm:$0xff]  ;;  %v78_v5 = vld [vmem:[#allocation2 + $0x18] sm:$0xff]  ;;  %vm446_vm2 = vcmask 31744  }
  0x28   :  { %124 = vmatpush1.msra.mxu0 %v81_v2  ;;  %v77_v6 = vld [vmem:[#allocation2 + $0x10] sm:$0xff]  ;;  %v203_v7 = vld [vmem:[#allocation5 + $0xf8] sm:$0xff]  ;;  %v201_v9 = vld [vmem:[#allocation5 + $0xe8] sm:$0xff] }
  0x29   :  { %125 = vmatprep.subr.mxu0 %v80_v3  ;;  %v202_v8 = vld [vmem:[#allocation5 + $0xf0] sm:$0xff]  ;;  %v76_v10 = vld [vmem:[#allocation2 + $0x8] sm:$0xff]  ;;  %248 = vmatprep.subr.mxu1 %v203_v7  ;;  %v200_v11 = vld [vmem:[#allocation5 + $0xe0] sm:$0xff] }
  0x2a   :  { %126 = vmatpush1.msra.mxu0 %v79_v4  ;;  %v75_v12 = vld [vmem:[#allocation2] sm:$0xff]  ;;  %249 = vmatpush1.msra.mxu1 %v202_v8  ;;  %v199_v13 = vld [vmem:[#allocation5 + $0xd8] sm:$0xff]  ;;  %v198_v15 = vld [vmem:[#allocation5 + $0xd0] sm:$0xff] }
  0x2b   :  { %127 = vmatprep.subr.mxu0 %v78_v5  ;;  %v74_v14 = vld [vmem:[%s693_s0] sm:$0xff]  ;;  %250 = vmatprep.subr.mxu1 %v201_v9  ;;  %v197_v16 = vld [vmem:[#allocation5 + $0xc8] sm:$0xff]  ;;  %v195_v18 = vld [vmem:[#allocation5 + $0xb8] sm:$0xff] }
  0x2c   :  { %128 = vmatpush1.msra.mxu0 %v77_v6  ;;  %251 = vmatpush1.msra.mxu1 %v200_v11  ;;  %v196_v17 = vld [vmem:[#allocation5 + $0xc0] sm:$0xff]  ;;  %v194_v19 = vld [vmem:[#allocation5 + $0xb0] sm:$0xff]  ;;  %v193_v20 = vld [vmem:[#allocation5 + $0xa8] sm:$0xff] }
  0x2d   :  { %129 = vmatprep.subr.mxu0 %v76_v10  ;;  %252 = vmatprep.subr.mxu1 %v199_v13  ;;  %v192_v21 = vld [vmem:[#allocation5 + $0xa0] sm:$0xff]  ;;  %v191_v22 = vld [vmem:[#allocation5 + $0x98] sm:$0xff]  ;;  %v190_v23 = vld [vmem:[#allocation5 + $0x90] sm:$0xff] }
  0x2e   :  { %130 = vmatpush1.msra.mxu0 %v75_v12  ;;  %253 = vmatpush1.msra.mxu1 %v198_v15  ;;  %v189_v24 = vld [vmem:[#allocation5 + $0x88] sm:$0xff]  ;;  %v188_v25 = vld [vmem:[#allocation5 + $0x80] sm:$0xff]  ;;  %v187_v26 = vld [vmem:[#allocation5 + $0x78] sm:$0xff] }
  0x2f   :  { %471 = vmatmul.mubr.msk.f32.vlgmr.msra.gmra.mxu0 %vm95_vm0, %v74_v14  ;;  %254 = vmatprep.subr.mxu1 %v197_v16  ;;  %v186_v27 = vld [vmem:[#allocation5 + $0x70] sm:$0xff]  ;;  %v185_v28 = vld [vmem:[#allocation5 + $0x68] sm:$0xff]  ;;  %v184_v29 = vld [vmem:[#allocation5 + $0x60] sm:$0xff] }
  0x30   :  { %255 = vmatpush1.msra.mxu1 %v196_v17  ;;  %v183_v30 = vld [vmem:[#allocation5 + $0x58] sm:$0xff]  ;;  %v182_v31 = vld [vmem:[#allocation5 + $0x50] sm:$0xff]  ;;  %v181_v32 = vld [vmem:[#allocation5 + $0x48] sm:$0xff] }
  0x31   :  { %256 = vmatprep.subr.mxu1 %v195_v18  ;;  %v180_v33 = vld [vmem:[#allocation5 + $0x40] sm:$0xff]  ;;  %v179_v34 = vld [vmem:[#allocation5 + $0x38] sm:$0xff]  ;;  %v178_v35 = vld [vmem:[#allocation5 + $0x30] sm:$0xff] }
  0x32   :  { %257 = vmatpush1.msra.mxu1 %v194_v19  ;;  %v177_v36 = vld [vmem:[#allocation5 + $0x28] sm:$0xff]  ;;  %v176_v37 = vld [vmem:[#allocation5 + $0x20] sm:$0xff]  ;;  %v175_v38 = vld [vmem:[#allocation5 + $0x18] sm:$0xff] }
  0x33   :  { %258 = vmatprep.subr.mxu1 %v193_v20  ;;  %v174_v39 = vld [vmem:[#allocation5 + $0x10] sm:$0xff]  ;;  %v173_v40 = vld [vmem:[#allocation5 + $0x8] sm:$0xff]  ;;  %v172_v41 = vld [vmem:[#allocation5] sm:$0xff] }
  0x34   :  { %259 = vmatpush1.msra.mxu1 %v192_v21  ;;  %v235_v42 = vld [vmem:[#allocation5 + $0x1f8] sm:$0xff]  ;;  %v234_v43 = vld [vmem:[#allocation5 + $0x1f0] sm:$0xff]  ;;  %v233_v44 = vld [vmem:[#allocation5 + $0x1e8] sm:$0xff] }
  0x35   :  { %260 = vmatprep.subr.mxu1 %v191_v22  ;;  %v232_v45 = vld [vmem:[#allocation5 + $0x1e0] sm:$0xff]  ;;  %v231_v46 = vld [vmem:[#allocation5 + $0x1d8] sm:$0xff]  ;;  %v230_v47 = vld [vmem:[#allocation5 + $0x1d0] sm:$0xff] }
  0x36   :  { %261 = vmatpush1.msra.mxu1 %v190_v23  ;;  %v229_v48 = vld [vmem:[#allocation5 + $0x1c8] sm:$0xff]  ;;  %v228_v49 = vld [vmem:[#allocation5 + $0x1c0] sm:$0xff]  ;;  %v227_v50 = vld [vmem:[#allocation5 + $0x1b8] sm:$0xff] }
  0x37   :  { %262 = vmatprep.subr.mxu1 %v189_v24  ;;  %v226_v51 = vld [vmem:[#allocation5 + $0x1b0] sm:$0xff]  ;;  %v225_v52 = vld [vmem:[#allocation5 + $0x1a8] sm:$0xff]  ;;  %v224_v53 = vld [vmem:[#allocation5 + $0x1a0] sm:$0xff] }
  0x38   :  { %263 = vmatpush1.msra.mxu1 %v188_v25  ;;  %v223_v54 = vld [vmem:[#allocation5 + $0x198] sm:$0xff]  ;;  %v222_v55 = vld [vmem:[#allocation5 + $0x190] sm:$0xff]  ;;  %v221_v56 = vld [vmem:[#allocation5 + $0x188] sm:$0xff] }
  0x39   :  { %264 = vmatprep.subr.mxu1 %v187_v26  ;;  %v220_v57 = vld [vmem:[#allocation5 + $0x180] sm:$0xff]  ;;  %v219_v58 = vld [vmem:[#allocation5 + $0x178] sm:$0xff]  ;;  %v218_v59 = vld [vmem:[#allocation5 + $0x170] sm:$0xff] }
  0x3a   :  { %265 = vmatpush1.msra.mxu1 %v186_v27  ;;  %v217_v60 = vld [vmem:[#allocation5 + $0x168] sm:$0xff]  ;;  %v216_v61 = vld [vmem:[#allocation5 + $0x160] sm:$0xff]  ;;  %v215_v62 = vld [vmem:[#allocation5 + $0x158] sm:$0xff] }
  0x3b   :  { %266 = vmatprep.subr.mxu1 %v185_v28  ;;  %v214_v63 = vld [vmem:[#allocation5 + $0x150] sm:$0xff]  ;;  %v213_v0 = vld [vmem:[#allocation5 + $0x148] sm:$0xff]  ;;  %v212_v1 = vld [vmem:[#allocation5 + $0x140] sm:$0xff] }
  0x3c   :  { %267 = vmatpush1.msra.mxu1 %v184_v29  ;;  %v211_v2 = vld [vmem:[#allocation5 + $0x138] sm:$0xff]  ;;  %v210_v3 = vld [vmem:[#allocation5 + $0x130] sm:$0xff]  ;;  %v209_v4 = vld [vmem:[#allocation5 + $0x128] sm:$0xff] }
  0x3d   :  { %268 = vmatprep.subr.mxu1 %v183_v30  ;;  %v208_v5 = vld [vmem:[#allocation5 + $0x120] sm:$0xff]  ;;  %v207_v6 = vld [vmem:[#allocation5 + $0x118] sm:$0xff]  ;;  %v206_v7 = vld [vmem:[#allocation5 + $0x110] sm:$0xff] }
  0x3e   :  { %269 = vmatpush1.msra.mxu1 %v182_v31  ;;  %v205_v8 = vld [vmem:[#allocation5 + $0x108] sm:$0xff]  ;;  %v204_v9 = vld [vmem:[#allocation5 + $0x100] sm:$0xff]  ;;  %v352_v10 = vld [vmem:[#allocation7 + $0xf8] sm:$0xff] }
  0x3f   :  { %270 = vmatprep.subr.mxu1 %v181_v32  ;;  %v336_v11 = vld [vmem:[#allocation7 + $0x78] sm:$0xff]  ;;  %v351_v12 = vld [vmem:[#allocation7 + $0xf0] sm:$0xff]  ;;  %474 = vmatprep.subr.mxu0 %v352_v10  ;;  %v350_v14 = vld [vmem:[#allocation7 + $0xe8] sm:$0xff] }
  0x40   :  { %271 = vmatpush1.msra.mxu1 %v180_v33  ;;  %v335_v13 = vld [vmem:[#allocation7 + $0x70] sm:$0xff]  ;;  %475 = vmatpush3.msra.mxu0 %v336_v11  ;;  %v334_v15 = vld [vmem:[#allocation7 + $0x68] sm:$0xff]  ;;  %v349_v16 = vld [vmem:[#allocation7 + $0xe0] sm:$0xff] }
  0x41   :  { %272 = vmatprep.subr.mxu1 %v179_v34  ;;  %476 = vmatprep.subr.mxu0 %v351_v12  ;;  %v333_v17 = vld [vmem:[#allocation7 + $0x60] sm:$0xff]  ;;  %v348_v18 = vld [vmem:[#allocation7 + $0xd8] sm:$0xff]  ;;  %v347_v20 = vld [vmem:[#allocation7 + $0xd0] sm:$0xff]  ;;  %v85_v34 = vlaneseq }
  0x42   :  { %273 = vmatpush1.msra.mxu1 %v178_v35  ;;  %477 = vmatpush3.msra.mxu0 %v335_v13  ;;  %v332_v19 = vld [vmem:[#allocation7 + $0x58] sm:$0xff]  ;;  %v331_v21 = vld [vmem:[#allocation7 + $0x50] sm:$0xff]  ;;  %v346_v22 = vld [vmem:[#allocation7 + $0xc8] sm:$0xff] }
  0x43   :  { %274 = vmatprep.subr.mxu1 %v177_v36  ;;  %478 = vmatprep.subr.mxu0 %v350_v14  ;;  %v330_v23 = vld [vmem:[#allocation7 + $0x48] sm:$0xff]  ;;  %v345_v24 = vld [vmem:[#allocation7 + $0xc0] sm:$0xff]  ;;  %v344_v26 = vld [vmem:[#allocation7 + $0xb8] sm:$0xff]  ;;  %v86_v35 = vshrl.u32 %v85_v34, 7 }
  0x44   :  { %275 = vmatpush1.msra.mxu1 %v176_v37  ;;  %479 = vmatpush3.msra.mxu0 %v334_v15  ;;  %v329_v25 = vld [vmem:[#allocation7 + $0x40] sm:$0xff]  ;;  %v328_v27 = vld [vmem:[#allocation7 + $0x38] sm:$0xff]  ;;  %v343_v28 = vld [vmem:[#allocation7 + $0xb0] sm:$0xff] }
  0x45   :  { %276 = vmatprep.subr.mxu1 %v175_v38  ;;  %480 = vmatprep.subr.mxu0 %v349_v16  ;;  %v327_v29 = vld [vmem:[#allocation7 + $0x30] sm:$0xff]  ;;  %v342_v30 = vld [vmem:[#allocation7 + $0xa8] sm:$0xff]  ;;  %v341_v32 = vld [vmem:[#allocation7 + $0xa0] sm:$0xff]  ;;  %v87_v36 = vsub.s32 0, %v86_v35  ;;  %v91_v38 = vsub.s32 1, %v86_v35 }
  0x46   :  { %277 = vmatpush1.msra.mxu1 %v174_v39  ;;  %481 = vmatpush3.msra.mxu0 %v333_v17  ;;  %v326_v31 = vld [vmem:[#allocation7 + $0x28] sm:$0xff]  ;;  %v325_v33 = vld [vmem:[#allocation7 + $0x20] sm:$0xff] }
  0x47   :  { %278 = vmatprep.subr.mxu1 %v173_v40  ;;  %482 = vmatprep.subr.mxu0 %v348_v18  ;;  %v83_v37 = vld [vmem:[%s697_s4] sm:$0x3] }
  0x48   :  { %279 = vmatpush1.msra.mxu1 %v172_v41  ;;  %483 = vmatpush3.msra.mxu0 %v332_v19  ;;  %v88_v39 = vrot.slane %v83_v37, %v87_v36  ;;  %v92_v40 = vrot.slane %v83_v37, %v91_v38  ;;  %v473_v10 = vld [vmem:[%s695_s2] ss:$0 sm:$0xff] }
  0x49   :  { %280 = vmatprep.subr.mxu1 %v235_v42  ;;  %484 = vmatprep.subr.mxu0 %v347_v20 }
  0x4a   :  { %281 = vmatpush2.msra.mxu1 %v234_v43  ;;  %485 = vmatpush3.msra.mxu0 %v331_v21 }
  0x4b   :  { %282 = vmatprep.subr.mxu1 %v233_v44  ;;  %486 = vmatprep.subr.mxu0 %v346_v22 }
  0x4c   :  { %283 = vmatpush2.msra.mxu1 %v232_v45  ;;  %487 = vmatpush3.msra.mxu0 %v330_v23 }
  0x4d   :  { %284 = vmatprep.subr.mxu1 %v231_v46  ;;  %488 = vmatprep.subr.mxu0 %v345_v24 }
  0x4e   :  { %285 = vmatpush2.msra.mxu1 %v230_v47  ;;  %489 = vmatpush3.msra.mxu0 %v329_v25  ;;  %v340_v47 = vld [vmem:[#allocation7 + $0x98] sm:$0xff] }
  0x4f   :  { %286 = vmatprep.subr.mxu1 %v229_v48  ;;  %490 = vmatprep.subr.mxu0 %v344_v26  ;;  %v324_v48 = vld [vmem:[#allocation7 + $0x18] sm:$0xff] }
  0x50   :  { %287 = vmatpush2.msra.mxu1 %v228_v49  ;;  %491 = vmatpush3.msra.mxu0 %v328_v27  ;;  %v339_v49 = vld [vmem:[#allocation7 + $0x90] sm:$0xff] }
  0x51   :  { %288 = vmatprep.subr.mxu1 %v227_v50  ;;  %492 = vmatprep.subr.mxu0 %v343_v28  ;;  %v323_v50 = vld [vmem:[#allocation7 + $0x10] sm:$0xff] }
  0x52   :  { %289 = vmatpush2.msra.mxu1 %v226_v51  ;;  %493 = vmatpush3.msra.mxu0 %v327_v29  ;;  %v338_v51 = vld [vmem:[#allocation7 + $0x88] sm:$0xff] }
  0x53   :  { %290 = vmatprep.subr.mxu1 %v225_v52  ;;  %494 = vmatprep.subr.mxu0 %v342_v30  ;;  %v322_v52 = vld [vmem:[#allocation7 + $0x8] sm:$0xff] }
  0x54   :  { %291 = vmatpush2.msra.mxu1 %v224_v53  ;;  %495 = vmatpush3.msra.mxu0 %v326_v31  ;;  %v337_v53 = vld [vmem:[#allocation7 + $0x80] sm:$0xff] }
  0x55   :  { %292 = vmatprep.subr.mxu1 %v223_v54  ;;  %496 = vmatprep.subr.mxu0 %v341_v32  ;;  %v321_v54 = vld [vmem:[#allocation7] sm:$0xff] }
  0x56   :  { %293 = vmatpush2.msra.mxu1 %v222_v55  ;;  %497 = vmatpush3.msra.mxu0 %v325_v33  ;;  %v236_v55 = vld [vmem:[%s699_s6] sm:$0x3] }
  0x57   :  { %294 = vmatprep.subr.mxu1 %v221_v56  ;;  %498 = vmatprep.subr.mxu0 %v340_v47  ;;  %v241_v56 = vrot.slane %v236_v55, %v87_v36 }
  0x58   :  { %295 = vmatpush2.msra.mxu1 %v220_v57  ;;  %499 = vmatpush3.msra.mxu0 %v324_v48  ;;  %v245_v57 = vrot.slane %v236_v55, %v91_v38 }
  0x59   :  { %296 = vmatprep.subr.mxu1 %v219_v58  ;;  %500 = vmatprep.subr.mxu0 %v339_v49 }
  0x5a   :  { %297 = vmatpush2.msra.mxu1 %v218_v59  ;;  %501 = vmatpush3.msra.mxu0 %v323_v50 }
  0x5b   :  { %298 = vmatprep.subr.mxu1 %v217_v60  ;;  %502 = vmatprep.subr.mxu0 %v338_v51 }
  0x5c   :  { %299 = vmatpush2.msra.mxu1 %v216_v61  ;;  %503 = vmatpush3.msra.mxu0 %v322_v52 }
  0x5d   :  { %300 = vmatprep.subr.mxu1 %v215_v62  ;;  %504 = vmatprep.subr.mxu0 %v337_v53 }
  0x5e   :  { %301 = vmatpush2.msra.mxu1 %v214_v63  ;;  %505 = vmatpush3.msra.mxu0 %v321_v54 }
  0x5f   :  { %302 = vmatprep.subr.mxu1 %v213_v0 }
  0x60   :  { %303 = vmatpush2.msra.mxu1 %v212_v1  ;;  %v472_v1 = vld [vmem:[%s701_s8] ss:$0 sm:$0xff]  ;;  %s612_s8 = smov [#allocation8]  }
  0x61   :  { %304 = vmatprep.subr.mxu1 %v211_v2  ;;  %s461_s13 = sshll.u32 %s612_s8, 4  ;;  %s462_s13 = int_to_ptr.vmem [resolvable:$true] %s461_s13 }
  0x62   :  { %305 = vmatpush2.msra.mxu1 %v210_v3  ;;  %v431_v3 = vand.u32 127, %v85_v34  ;;  %p583_p2 = scmp.lt.s32.totalorder %s462_s13, %s462_s13 }
  0x63   :  { %306 = vmatprep.subr.mxu1 %v209_v4 }
  0x64   :  { %307 = vmatpush2.msra.mxu1 %v208_v5  ;;  %vm432_vm1 = vcmp.lt.s32.totalorder %v431_v3, 4  ;;  %vm450_vm3 = vcmp.eq.s32.totalorder %v431_v3, 5 }
  0x65   :  { %308 = vmatprep.subr.mxu1 %v207_v6 }
  0x66   :  { %309 = vmatpush2.msra.mxu1 %v206_v7  ;;  %v435_v7 = vld [vmem:[%s694_s1] sm:$0xff]  ;;  %s578_s1 = scalar_lea.vmem %s462_s13, 128 }
  0x67   :  { %310 = vmatprep.subr.mxu1 %v205_v8  ;;  %p579_p1 = scmp.ne.s32.totalorder %s462_s13, %s578_s1  ;;  %p584_p3 = scmp.lt.s32.totalorder %s578_s1, %s578_s1 }
  0x68   :  { %311 = vmatpush2.msra.mxu1 %v204_v9 }
  0x69   :  { %p585_p4 = por %p584_p3, %p583_p2 }
  0x6b   :  { %p586_p5 = pnand %p585_p4, %p579_p1 }
  0xef   :  { %v165_v41 = vpop.f32.mrf.mxu0 }
  0xf0   :  { %v166_v42 = vadd.f32 %v165_v41, %v88_v39 }
  0xf1   :  { %v167_v43 = vpop.f32.mrf.mxu0 }
  0xf2   :  { %v168_v44 = vadd.f32 %v167_v43, %v92_v40  ;;  %v170_v46 = vmax.f32 %v166_v42, 0.0 }
  0xf4   :  { %v171_v45 = vmax.f32 %v168_v44, 0.0 }
  0xf6   :  { %312 = vmatprep.mubr.f32.mxu1 %v171_v45 }
  0xf7   :  { %313 = vmatmul.mubr.f32.vlgmr.msra.gmra.mxu1 %v170_v46 }
 0x1b7   :  { %v314_v58 = vpop.f32.mrf.mxu1 }
 0x1b8   :  { %v315_v59 = vadd.f32 %v314_v58, %v241_v56 }
 0x1b9   :  { %v316_v60 = vpop.f32.mrf.mxu1 }
 0x1ba   :  { %v317_v61 = vadd.f32 %v316_v60, %v245_v57  ;;  %v319_v63 = vmax.f32 %v315_v59, 0.0 }
 0x1bc   :  { %v320_v62 = vmax.f32 %v317_v61, 0.0 }
 0x1be   :  { %424 = vmatprep.mubr.f32.mxu0 %v320_v62 }
 0x1bf   :  { %425 = vmatmul.mubr.f32.vlgmr.msra.gmra.mxu0 %v319_v63 }
 0x27f   :  { %v506_v0 = vpop.f32.mrf.mxu0 }
 0x281   :  { %v507_v2 = vpop.f32.mrf.mxu0 }
 0x282   :  { %v508_v4 = vadd.f32 %v507_v2, %v506_v0 }
 0x284   :  { %v427_v5 = vadd.f32 %v508_v4, %v472_v1 }
 0x286   :  { %v433_v6 = vmax.f32 %v427_v5, 0.0 }
 0x288   :  { %v434_v8 = vsel %vm432_vm1, %v433_v6, %v427_v5 }
 0x289   :  { %v436_v9 = vsub.f32 %v435_v7, %v434_v8 }
 0x28b   :  { %v437_v11 = vmul.f32 %v436_v9, %v436_v9 }
 0x28d   :  { %v445_v12 = vmul.f32 %v473_v10, %v437_v11 }
 0x28f   :  { %v447_v13 = vsel %vm446_vm2, %v445_v12, 0.0 }
 0x290   :  { %448 = vadd.xlane.f32.xlu0 %v447_v13 }
 0x319   :  { %v449_v14 = vpop.xlane.xlu0 %448 }
 0x31a   :  { %v451_v15 = vmul.f32 -0.5, %v449_v14 }
 0x31c   :  { %v452_v16 = vsel %vm450_vm3, %v451_v15, 0.0 }
 0x31d   :  { %v453_v17 = vadd.f32 %v452_v16, %v434_v8 }
 0x31f   :  { %454 = vst [vmem:[#allocation8] sm:$0xff] %v453_v17 }
 0x320   :  { %589 = shalt.err (!%p586_p5)
}
 0x321   :  { %464 = dma.vmem_to_hbm [thread:$0]  %s462_s13, 128, %s702_s9, [#allocation4]  }
 0x322   :  { %602 = dma.done.wait [#allocation4], 128  }
 0x323   :  { %603 = vsyncadd [#allocation4], 4294967168 }
 0x324   :  { %468 = vsyncpa [#allocation3], 1 }
 0x325   :  { %469 = vsyncpa [#allocation6], 1 }
 0x326   :  { %470 = vsyncpa [#allocation4], 1 }

</bundles_post_ra>
